<compile_context>
chip_gen: v7x
topology: tpu7x:2x2x1
jax: 0.10.0
libtpu: 0.0.40
codegen_flags: <defaults>
</compile_context>

<pallas_src>
import math
from functools import partial

import jax
import jax.numpy as jnp
from jax.experimental import pallas as pl
from jax.experimental.pallas import tpu as pltpu


# ---------------------------------------------------------------------------
# Kernel
# ---------------------------------------------------------------------------
def _conv1d_kernel(*refs, seq_tile, temporal_width, has_front, roll_mode):
    """One (batch, width-tile, seq-tile) grid step.

    refs (has_front=True):  x_ref, front_ref, w_ref, b_ref, out_ref, cache_ref, halo_ref
    refs (has_front=False): x_ref,            w_ref, b_ref, out_ref, cache_ref, halo_ref

    x_ref     : (TS, Wb)   current sequence tile of x (x dtype)
    front_ref : (TW-1, Wb) initial left halo (the cache), only when has_front
    w_ref     : (TW, Wb)   conv weights
    b_ref     : (1, Wb)    bias
    out_ref   : (TS, Wb)   conv output tile
    cache_ref : (TW-1, Wb) new cache (written at the last seq tile)
    halo_ref  : (TW-1, Wb) persistent VMEM scratch (x dtype): previous TW-1
                            input rows, carried across seq tiles.
    """
    if has_front:
        x_ref, front_ref, w_ref, b_ref, out_ref, cache_ref, halo_ref = refs
    else:
        x_ref, w_ref, b_ref, out_ref, cache_ref, halo_ref = refs

    TW = temporal_width
    TS = seq_tile
    si = pl.program_id(2)

    # CORRECTNESS NOTE: the halo carry requires the seq axis to be the LAST
    # (innermost) grid axis, executed sequentially on one core while this VMEM
    # scratch persists.  Never reorder the grid or make the seq axis
    # parallel / core_parallel.
    @pl.when(si == 0)
    def _():
        if has_front:
            halo_ref[...] = front_ref[...]
        else:
            halo_ref[...] = jnp.zeros_like(halo_ref)

    x32 = x_ref[...].astype(jnp.float32)            # single full-tile load
    halo32 = halo_ref[...].astype(jnp.float32)      # (TW-1, Wb), tiny
    w32 = w_ref[...].astype(jnp.float32)            # (TW, Wb)
    b32 = b_ref[...].astype(jnp.float32)            # (1, Wb)
    Wb = x32.shape[1]

    # Bulk of the tile: out[t] = b + sum_d w[TW-1-d] * x[t-d].  Shifted copies
    # of x come from XLU sublane rolls (no f32 stitch copy, no misaligned
    # full-tile re-reads).  Rows t < d pick up wrapped values and are rewritten
    # below.  The accumulator is seeded with the bias -- a benign f32
    # summation-order difference vs. the reference (bias added last there).
    acc = jnp.broadcast_to(b32, (TS, Wb))
    for d in range(TW):                              # TW is small & static
        if d == 0:
            shifted = x32
        elif roll_mode == "xlu":
            shifted = pltpu.roll(x32, shift=d, axis=0)
        elif roll_mode == "xlu_neg":
            shifted = pltpu.roll(x32, shift=-d, axis=0)
        else:  # portable fallback: lowers to slice+concat
            shifted = jnp.roll(x32, d, axis=0)
        acc = acc + shifted * w32[TW - 1 - d:TW - d, :]
    out_ref[...] = acc.astype(out_ref.dtype)

    # The first TW-1 rows depend on the halo: recompute them exactly from
    # stitched = [halo ; x] (out[t] = b + sum_k w[k] * stitched[t+k]) and
    # overwrite.  These are (TW-1) single-row ops -- tiny.
    for t in range(TW - 1):
        row = b32
        for k in range(TW):
            idx = t + k
            if idx < TW - 1:
                src = halo32[idx:idx + 1, :]
            else:
                src = x32[idx - (TW - 1):idx - (TW - 1) + 1, :]
            row = row + src * w32[k:k + 1, :]
        out_ref[t:t + 1, :] = row.astype(out_ref.dtype)

    # Carry the halo forward in x dtype; emit new_cache at the last seq tile
    # straight from x (no f32 round trip).  Requires TS >= TW-1 (enforced by
    # the wrapper's tile planner).
    tail = x_ref[TS - (TW - 1):TS, :]

    @pl.when(si == pl.num_programs(2) - 1)
    def _():
        cache_ref[...] = tail.astype(cache_ref.dtype)

    halo_ref[...] = tail


# ---------------------------------------------------------------------------
# Tiling helpers
# ---------------------------------------------------------------------------
def _round_up(x, m):
    return ((x + m - 1) // m) * m


def _vmem_capacity_bytes():
    try:
        cap = getattr(pltpu.get_tpu_info(), "vmem_capacity_bytes", None)
        if cap:
            return int(cap)
    except Exception:
        pass
    return 64 * 1024 * 1024       # conservative default (v7x per-core VMEM)


def _choose_width_tile(width, wb_max, batch):
    """Lane-dense (multiple of 128) width tile when W allows, else full width."""
    if width % 128 != 0:
        # TODO(synk): for W < 128 a transposed (seq-on-lanes) layout would avoid
        # wasting lanes on every op/store; not implemented here.
        return width
    start = (min(width, max(wb_max, 128)) // 128) * 128
    wb = 128
    for cand in range(start, 127, -128):
        if width % cand == 0:
            wb = cand
            break
    # v7x megacore: the seq axis can't be split (it carries the halo), so make
    # sure batch * n_width_tiles >= 2 whenever the shape allows it.
    if batch == 1 and width // wb == 1 and wb % 256 == 0:
        wb //= 2
    return wb


def _seq_tile_cap(Wb, TW, x_itemsize, out_itemsize, cache_itemsize, vmem_cap):
    """Largest seq tile (multiple of 8) whose working set (double-buffered
    in/out streams + ~3 tile-sized f32 temporaries) stays within ~50% of the
    per-core VMEM capacity."""
    budget = vmem_cap // 2
    per_row = Wb * (2 * (x_itemsize + out_itemsize) + 3 * 4)
    fixed = Wb * ((TW - 1) * (3 * x_itemsize + 2 * cache_itemsize)
                  + 2 * (TW + 1) * 4)
    cap = max(8, (budget - fixed) // per_row)
    return max(8, (cap // 8) * 8)


def _plan_seq(S, ts_max, ts_min):
    """Pick the seq tile.  Returns (TS, S_pad); S_pad > S means the wrapper
    zero-pads x (never falls back to TS == S for awkward S)."""
    ts_max = max(ts_min, (ts_max // 8) * 8)
    if S <= ts_max:
        if S % 8 == 0 and S >= ts_min:
            return S, S
        ts = min(ts_max, max(_round_up(S, 8), ts_min))
        return ts, _round_up(S, ts)
    for ts in range(ts_max, ts_min - 1, -8):
        if S % ts == 0:
            return ts, S
    return ts_max, _round_up(S, ts_max)


def _compute_vmem_limit(TS, Wb, TW, x_dtype, out_dtype, cache_dtype,
                        has_front, vmem_cap):
    xb = jnp.dtype(x_dtype).itemsize
    ob = jnp.dtype(out_dtype).itemsize
    cb = jnp.dtype(cache_dtype).itemsize
    limit = 2 * TS * Wb * (xb + ob)          # double-buffered x in / out tiles
    limit += 3 * TS * Wb * 4                 # f32 temporaries (x32/rolled/acc)
    limit += 2 * (TW - 1) * Wb * cb          # cache output blocks
    limit += (TW - 1) * Wb * xb              # halo scratch
    if has_front:
        limit += 2 * (TW - 1) * Wb * xb      # front (cache) input blocks
    limit += 2 * (TW + 1) * Wb * 4           # w + b blocks
    limit = int(limit * 1.25) + (2 << 20)    # margin
    limit = max(limit, 16 << 20)
    return int(min(limit, int(vmem_cap * 0.9)))


# ---------------------------------------------------------------------------
# pltpu.roll direction / availability probe (one tiny kernel, cached)
# ---------------------------------------------------------------------------
_ROLL_MODE = None


def _roll_mode():
    """'xlu' if pltpu.roll matches jnp.roll, 'xlu_neg' if the sign is flipped,
    'jnp' if sublane rolls are unavailable on this Pallas/Mosaic version."""
    global _ROLL_MODE
    if _ROLL_MODE is not None:
        return _ROLL_MODE
    try:
        def probe(x_ref, o_ref):
            o_ref[...] = pltpu.roll(x_ref[...], shift=1, axis=0)

        x = jnp.arange(8 * 128, dtype=jnp.float32).reshape(8, 128)
        got = pl.pallas_call(
            probe, out_shape=jax.ShapeDtypeStruct((8, 128), jnp.float32))(x)
        if bool(jnp.array_equal(got, jnp.roll(x, 1, axis=0))):
            _ROLL_MODE = "xlu"
        elif bool(jnp.array_equal(got, jnp.roll(x, -1, axis=0))):
            _ROLL_MODE = "xlu_neg"
        else:
            _ROLL_MODE = "jnp"
    except Exception:
        _ROLL_MODE = "jnp"
    return _ROLL_MODE


# ---------------------------------------------------------------------------
# Wrapper
# ---------------------------------------------------------------------------
def conv1d_forward(x, w, b, segment_pos=None, cache=None, return_cache=True,
                   seq_tile_max=2048, width_tile_max=512):
    """Pallas version of Conv1D.forward.

    x: (B, S, W); w: (TW, W); b: (W,); cache: (B, TW-1, W) or None.
    Returns (conv_out, new_cache) matching the PyTorch module.
    """
    # TODO(synk): segment_pos is accepted for API parity; the reference forward
    # never reads it, so it is ignored here as well.
    B, S, W = x.shape
    TW = int(w.shape[0])
    cache_dtype = cache.dtype if cache is not None else x.dtype

    if TW == 1:
        # Degenerate kernel width: plain scale + bias.
        conv_out = (x.astype(jnp.float32) * w[0][None, None, :].astype(jnp.float32)
                    + b[None, None, :].astype(jnp.float32)).astype(x.dtype)
        if not return_cache:
            return conv_out, None
        xf = x if cache is None else jnp.concatenate(
            [cache.astype(x.dtype), x], axis=1)
        return conv_out, xf[:, 1 - TW:].astype(cache_dtype)

    has_front = cache is not None
    front = cache.astype(x.dtype) if has_front else None

    # ---- tiling (VMEM-budget aware) ---------------------------------------
    Wb = _choose_width_tile(W, width_tile_max, B)
    nw = W // Wb
    vmem_cap = _vmem_capacity_bytes()
    xb = jnp.dtype(x.dtype).itemsize
    cb = jnp.dtype(cache_dtype).itemsize
    ts_min = _round_up(max(8, TW - 1), 8)
    ts_cap = _seq_tile_cap(Wb, TW, xb, xb, cb, vmem_cap)
    ts_max = max(ts_min, min(seq_tile_max, ts_cap))
    TS, S_pad = _plan_seq(S, ts_max, ts_min)
    padded = S_pad != S
    x_in = jnp.pad(x, ((0, 0), (0, S_pad - S), (0, 0))) if padded else x
    ns = S_pad // TS

    in_specs = [pl.BlockSpec((pl.Squeezed(), TS, Wb),
                             lambda bb, wi, si: (bb, si, wi))]
    operands = [x_in]
    if has_front:
        in_specs.append(pl.BlockSpec((pl.Squeezed(), TW - 1, Wb),
                                     lambda bb, wi, si: (bb, 0, wi)))
        operands.append(front)
    in_specs += [pl.BlockSpec((TW, Wb), lambda bb, wi, si: (0, wi)),
                 pl.BlockSpec((1, Wb), lambda bb, wi, si: (0, wi))]
    operands += [w, b.reshape(1, W)]

    vmem_limit = _compute_vmem_limit(TS, Wb, TW, x.dtype, x.dtype, cache_dtype,
                                     has_front, vmem_cap)

    def _run(roll_mode):
        kernel = partial(_conv1d_kernel, seq_tile=TS, temporal_width=TW,
                         has_front=has_front, roll_mode=roll_mode)
        return pl.pallas_call(
            kernel,
            out_shape=(
                jax.ShapeDtypeStruct((B, S_pad, W), x.dtype),
                jax.ShapeDtypeStruct((B, TW - 1, W), cache_dtype),
            ),
            grid_spec=pltpu.PrefetchScalarGridSpec(
                num_scalar_prefetch=0,
                # seq axis LAST: it is sequential and carries the halo scratch.
                grid=(B, nw, ns),
                in_specs=in_specs,
                out_specs=[
                    pl.BlockSpec((pl.Squeezed(), TS, Wb),
                                 lambda bb, wi, si: (bb, si, wi)),
                    pl.BlockSpec((pl.Squeezed(), TW - 1, Wb),
                                 lambda bb, wi, si: (bb, 0, wi)),
                ],
                scratch_shapes=[pltpu.VMEM((TW - 1, Wb), x.dtype)],
            ),
            compiler_params=pltpu.CompilerParams(
                dimension_semantics=("parallel", "parallel", "arbitrary"),
                vmem_limit_bytes=vmem_limit,
            ),
        )(*operands)

    mode = _roll_mode()
    try:
        conv_out, kernel_cache = _run(mode)
    except Exception:
        if mode == "jnp":
            raise
        conv_out, kernel_cache = _run("jnp")   # portable fallback path

    if padded:
        conv_out = conv_out[:, :S]
        # The in-kernel cache tail saw padded zeros; rebuild from the real x.
        if S >= TW - 1:
            new_cache = x[:, S - (TW - 1):].astype(cache_dtype)
        else:
            f = front if has_front else jnp.zeros((B, TW - 1, W), x.dtype)
            new_cache = jnp.concatenate([f, x], axis=1)[:, 1 - TW:].astype(cache_dtype)
    else:
        new_cache = kernel_cache

    if not return_cache:
        return conv_out, None
    return conv_out, new_cache


# ---------------------------------------------------------------------------
# Pure-jnp reference (direct transcription of the PyTorch forward)
# ---------------------------------------------------------------------------
def _ref_forward(x, w, b, cache=None):
    B, S, W = x.shape
    TW = w.shape[0]
    if cache is not None:
        x_full = jnp.concatenate([cache.astype(x.dtype), x], axis=1)
        prompt_len = TW - 1
    else:
        x_full = x
        prompt_len = 0
    conv_out = jnp.zeros_like(x)
    for shift in range(TW):
        start_idx = max(prompt_len - shift, 0)
        end_idx = prompt_len + S - shift
        if start_idx >= end_idx:
            continue
        x_window = x_full[:, start_idx:end_idx]
        pad_len = S - x_window.shape[1]
        x_window = jnp.concatenate(
            [jnp.zeros((B, pad_len, W), x.dtype), x_window], axis=1)
        conv_out = conv_out + x_window * w[TW - shift - 1][None, None, :]
    return conv_out + b[None, None, :]


if __name__ == "__main__":
    # --- Test 1: module's natural small shapes ------------------------------
    batch, seq_len, width, temporal_width = 2, 8, 32, 4
    w_init_variance_scale = 0.01

    key = jax.random.PRNGKey(0)
    kx, kw, kc, kx2, kw2, kb2, kx3, kc3 = jax.random.split(key, 8)

    std = math.sqrt(w_init_variance_scale / temporal_width)
    w = std * jax.random.normal(kw, (temporal_width, width), dtype=jnp.float32)
    b = jnp.zeros((width,), dtype=jnp.float32)

    x = jax.random.normal(kx, (batch, seq_len, width), dtype=jnp.float32)
    segment_pos = jnp.broadcast_to(jnp.arange(seq_len, dtype=jnp.int32),
                                   (batch, seq_len))
    cache = jax.random.normal(kc, (batch, temporal_width - 1, width),
                              dtype=jnp.float32)

    out_c, new_cache_c = conv1d_forward(x, w, b, segment_pos, cache=cache)
    out_nc, new_cache_nc = conv1d_forward(x, w, b, segment_pos, cache=None)
    jax.block_until_ready((out_c, new_cache_c, out_nc, new_cache_nc))

    ref_c = _ref_forward(x, w, b, cache=cache)
    ref_nc = _ref_forward(x, w, b, cache=None)
    assert jnp.allclose(out_c, ref_c, atol=1e-5, rtol=1e-5)
    assert jnp.allclose(out_nc, ref_nc, atol=1e-5, rtol=1e-5)
    assert jnp.allclose(
        new_cache_c,
        jnp.concatenate([cache, x], axis=1)[:, 1 - temporal_width:],
        atol=0, rtol=0)
    assert jnp.allclose(new_cache_nc, x[:, 1 - temporal_width:], atol=0, rtol=0)

    # --- Test 2: multi-tile seq (halo carry) + width tiling -----------------
    B2, S2, W2, TW2 = 1, 64, 256, 4
    w2 = std * jax.random.normal(kw2, (TW2, W2), dtype=jnp.float32)
    b2 = 0.1 * jax.random.normal(kb2, (W2,), dtype=jnp.float32)
    x2 = jax.random.normal(kx2, (B2, S2, W2), dtype=jnp.float32)
    cache2 = jax.random.normal(kc, (B2, TW2 - 1, W2), dtype=jnp.float32)

    out2, new_cache2 = conv1d_forward(x2, w2, b2, None, cache=cache2,
                                      seq_tile_max=16, width_tile_max=128)
    jax.block_until_ready((out2, new_cache2))
    ref2 = _ref_forward(x2, w2, b2, cache=cache2)
    assert jnp.allclose(out2, ref2, atol=1e-5, rtol=1e-5)
    assert jnp.allclose(
        new_cache2,
        jnp.concatenate([cache2, x2], axis=1)[:, 1 - TW2:],
        atol=0, rtol=0)

    # --- Test 3: awkward (non-divisible) seq length -> padded path ----------
    B3, S3, W3, TW3 = 2, 20, 128, 4
    w3 = std * jax.random.normal(kw2, (TW3, W3), dtype=jnp.float32)
    b3 = 0.05 * jax.random.normal(kb2, (W3,), dtype=jnp.float32)
    x3 = jax.random.normal(kx3, (B3, S3, W3), dtype=jnp.float32)
    cache3 = jax.random.normal(kc3, (B3, TW3 - 1, W3), dtype=jnp.float32)

    out3, new_cache3 = conv1d_forward(x3, w3, b3, None, cache=cache3,
                                      seq_tile_max=8)
    jax.block_until_ready((out3, new_cache3))
    ref3 = _ref_forward(x3, w3, b3, cache=cache3)
    assert jnp.allclose(out3, ref3, atol=1e-5, rtol=1e-5)
    assert jnp.allclose(
        new_cache3,
        jnp.concatenate([cache3, x3], axis=1)[:, 1 - TW3:],
        atol=0, rtol=0)

    print("KERNEL_OK")
</pallas_src>

<mosaic_0001>
module attributes {stable_mosaic.version = 11 : i64} {
  func.func @probe(%arg0: memref<8x128xf32, #tpu.memory_space<vmem>>, %arg1: memref<8x128xf32, #tpu.memory_space<vmem>>) attributes {dimension_semantics = [], scalar_prefetch = 0 : i64, scratch_operands = 0 : i64, tpu.core_type = #tpu.core_type<tc>} {
    %c0 = arith.constant 0 : index
    %c0_0 = arith.constant 0 : index
    %0 = vector.load %arg0[%c0, %c0_0] : memref<8x128xf32, #tpu.memory_space<vmem>>, vector<8x128xf32>
    %c1_i32 = arith.constant 1 : i32
    %1 = tpu.dynamic_rotate %0 by %c1_i32 dim 0 : vector<8x128xf32>, i32 -> vector<8x128xf32>
    %c0_1 = arith.constant 0 : index
    %c0_2 = arith.constant 0 : index
    %2 = vector.load %arg1[%c0_1, %c0_2] : memref<8x128xf32, #tpu.memory_space<vmem>>, vector<8x128xf32>
    tpu.vector_store %arg1[%c0_1, %c0_2], %1 {strides = array<i32>} : memref<8x128xf32, #tpu.memory_space<vmem>>, vector<8x128xf32>,
    return
  }
}

module attributes {stable_mosaic.version = 11 : i64} {
  func.func @_conv1d_kernel(%arg0: i32, %arg1: i32, %arg2: i32, %arg3: memref<1x8x32xf32, #tpu.memory_space<vmem>>, %arg4: memref<1x3x32xf32, #tpu.memory_space<vmem>>, %arg5: memref<4x32xf32, #tpu.memory_space<vmem>>, %arg6: memref<1x32xf32, #tpu.memory_space<vmem>>, %arg7: memref<1x8x32xf32, #tpu.memory_space<vmem>>, %arg8: memref<1x3x32xf32, #tpu.memory_space<vmem>>, %arg9: memref<3x32xf32, #tpu.memory_space<vmem>>) attributes {dimension_semantics = [#tpu.dimension_semantics<parallel>, #tpu.dimension_semantics<parallel>, #tpu.dimension_semantics<arbitrary>], iteration_bounds = array<i64: 2, 1, 1>, scalar_prefetch = 0 : i64, scratch_operands = 1 : i64, tpu.core_type = #tpu.core_type<tc>, window_params = [{transform_indices = @transform_0, window_bounds = array<i64: 1, 8, 32>}, {transform_indices = @transform_1, window_bounds = array<i64: 1, 3, 32>}, {transform_indices = @transform_2, window_bounds = array<i64: 4, 32>}, {transform_indices = @transform_3, window_bounds = array<i64: 1, 32>}, {transform_indices = @transform_4, window_bounds = array<i64: 1, 8, 32>}, {transform_indices = @transform_5, window_bounds = array<i64: 1, 3, 32>}]} {
    %c0_i32 = arith.constant 0 : i32
    %0 = arith.cmpi eq, %arg2, %c0_i32 : i32
    %1 = arith.extui %0 : i1 to i32
    %c0_i32_0 = arith.constant 0 : i32
    %2 = arith.cmpi ne, %1, %c0_i32_0 : i32
    scf.if %2 {
      %c0_25 = arith.constant 0 : index
      %c0_26 = arith.constant 0 : index
      %c0_27 = arith.constant 0 : index
      %101 = vector.load %arg4[%c0_25, %c0_26, %c0_27] : memref<1x3x32xf32, #tpu.memory_space<vmem>>, vector<1x3x32xf32>
      %102 = vector.shape_cast %101 : vector<1x3x32xf32> to vector<3x32xf32>
      %c0_28 = arith.constant 0 : index
      %c0_29 = arith.constant 0 : index
      %103 = vector.load %arg9[%c0_28, %c0_29] : memref<3x32xf32, #tpu.memory_space<vmem>>, vector<3x32xf32>
      tpu.vector_store %arg9[%c0_28, %c0_29], %102 {strides = array<i32>} : memref<3x32xf32, #tpu.memory_space<vmem>>, vector<3x32xf32>,
    } else {
    }
    %c0 = arith.constant 0 : index
    %c0_1 = arith.constant 0 : index
    %c0_2 = arith.constant 0 : index
    %3 = vector.load %arg3[%c0, %c0_1, %c0_2] : memref<1x8x32xf32, #tpu.memory_space<vmem>>, vector<1x8x32xf32>
    %4 = vector.shape_cast %3 : vector<1x8x32xf32> to vector<8x32xf32>
    %c0_3 = arith.constant 0 : index
    %c0_4 = arith.constant 0 : index
    %5 = vector.load %arg9[%c0_3, %c0_4] : memref<3x32xf32, #tpu.memory_space<vmem>>, vector<3x32xf32>
    %c0_5 = arith.constant 0 : index
    %c0_6 = arith.constant 0 : index
    %6 = vector.load %arg5[%c0_5, %c0_6] : memref<4x32xf32, #tpu.memory_space<vmem>>, vector<4x32xf32>
    %c0_7 = arith.constant 0 : index
    %c0_8 = arith.constant 0 : index
    %7 = vector.load %arg6[%c0_7, %c0_8] : memref<1x32xf32, #tpu.memory_space<vmem>>, vector<1x32xf32>
    %8 = vector.shape_cast %7 : vector<1x32xf32> to vector<1x32xf32>
    %9 = vector.broadcast %8 : vector<1x32xf32> to vector<8x32xf32>
    %10 = vector.extract_strided_slice %6 {offsets = [3, 0], sizes = [1, 32], strides = [1, 1]} : vector<4x32xf32> to vector<1x32xf32>
    %11 = vector.broadcast %10 : vector<1x32xf32> to vector<8x32xf32>
    %12 = arith.mulf %4, %11 : vector<8x32xf32>
    %13 = arith.addf %9, %12 : vector<8x32xf32>
    %14 = vector.extract_strided_slice %4 {offsets = [7, 0], sizes = [1, 32], strides = [1, 1]} : vector<8x32xf32> to vector<1x32xf32>
    %15 = vector.extract_strided_slice %4 {offsets = [0, 0], sizes = [7, 32], strides = [1, 1]} : vector<8x32xf32> to vector<7x32xf32>
    %16 = tpu.concatenate %14, %15 in 0 : vector<1x32xf32>, vector<7x32xf32> -> vector<8x32xf32>
    %17 = vector.extract_strided_slice %6 {offsets = [2, 0], sizes = [1, 32], strides = [1, 1]} : vector<4x32xf32> to vector<1x32xf32>
    %18 = vector.broadcast %17 : vector<1x32xf32> to vector<8x32xf32>
    %19 = arith.mulf %16, %18 : vector<8x32xf32>
    %20 = arith.addf %13, %19 : vector<8x32xf32>
    %21 = vector.extract_strided_slice %4 {offsets = [6, 0], sizes = [2, 32], strides = [1, 1]} : vector<8x32xf32> to vector<2x32xf32>
    %22 = vector.extract_strided_slice %4 {offsets = [0, 0], sizes = [6, 32], strides = [1, 1]} : vector<8x32xf32> to vector<6x32xf32>
    %23 = tpu.concatenate %21, %22 in 0 : vector<2x32xf32>, vector<6x32xf32> -> vector<8x32xf32>
    %24 = vector.extract_strided_slice %6 {offsets = [1, 0], sizes = [1, 32], strides = [1, 1]} : vector<4x32xf32> to vector<1x32xf32>
    %25 = vector.broadcast %24 : vector<1x32xf32> to vector<8x32xf32>
    %26 = arith.mulf %23, %25 : vector<8x32xf32>
    %27 = arith.addf %20, %26 : vector<8x32xf32>
    %28 = vector.extract_strided_slice %4 {offsets = [5, 0], sizes = [3, 32], strides = [1, 1]} : vector<8x32xf32> to vector<3x32xf32>
    %29 = vector.extract_strided_slice %4 {offsets = [0, 0], sizes = [5, 32], strides = [1, 1]} : vector<8x32xf32> to vector<5x32xf32>
    %30 = tpu.concatenate %28, %29 in 0 : vector<3x32xf32>, vector<5x32xf32> -> vector<8x32xf32>
    %31 = vector.extract_strided_slice %6 {offsets = [0, 0], sizes = [1, 32], strides = [1, 1]} : vector<4x32xf32> to vector<1x32xf32>
    %32 = vector.broadcast %31 : vector<1x32xf32> to vector<8x32xf32>
    %33 = arith.mulf %30, %32 : vector<8x32xf32>
    %34 = arith.addf %27, %33 : vector<8x32xf32>
    %c0_9 = arith.constant 0 : index
    %c0_10 = arith.constant 0 : index
    %c0_11 = arith.constant 0 : index
    %35 = vector.load %arg7[%c0_9, %c0_10, %c0_11] : memref<1x8x32xf32, #tpu.memory_space<vmem>>, vector<1x8x32xf32>
    %36 = vector.shape_cast %35 : vector<1x8x32xf32> to vector<8x32xf32>
    %37 = vector.shape_cast %34 : vector<8x32xf32> to vector<1x8x32xf32>
    tpu.vector_store %arg7[%c0_9, %c0_10, %c0_11], %37 {strides = array<i32>} : memref<1x8x32xf32, #tpu.memory_space<vmem>>, vector<1x8x32xf32>,
    %38 = vector.extract_strided_slice %5 {offsets = [0, 0], sizes = [1, 32], strides = [1, 1]} : vector<3x32xf32> to vector<1x32xf32>
    %39 = vector.extract_strided_slice %6 {offsets = [0, 0], sizes = [1, 32], strides = [1, 1]} : vector<4x32xf32> to vector<1x32xf32>
    %40 = arith.mulf %38, %39 : vector<1x32xf32>
    %41 = arith.addf %7, %40 : vector<1x32xf32>
    %42 = vector.extract_strided_slice %5 {offsets = [1, 0], sizes = [1, 32], strides = [1, 1]} : vector<3x32xf32> to vector<1x32xf32>
    %43 = vector.extract_strided_slice %6 {offsets = [1, 0], sizes = [1, 32], strides = [1, 1]} : vector<4x32xf32> to vector<1x32xf32>
    %44 = arith.mulf %42, %43 : vector<1x32xf32>
    %45 = arith.addf %41, %44 : vector<1x32xf32>
    %46 = vector.extract_strided_slice %5 {offsets = [2, 0], sizes = [1, 32], strides = [1, 1]} : vector<3x32xf32> to vector<1x32xf32>
    %47 = vector.extract_strided_slice %6 {offsets = [2, 0], sizes = [1, 32], strides = [1, 1]} : vector<4x32xf32> to vector<1x32xf32>
    %48 = arith.mulf %46, %47 : vector<1x32xf32>
    %49 = arith.addf %45, %48 : vector<1x32xf32>
    %50 = vector.extract_strided_slice %4 {offsets = [0, 0], sizes = [1, 32], strides = [1, 1]} : vector<8x32xf32> to vector<1x32xf32>
    %51 = vector.extract_strided_slice %6 {offsets = [3, 0], sizes = [1, 32], strides = [1, 1]} : vector<4x32xf32> to vector<1x32xf32>
    %52 = arith.mulf %50, %51 : vector<1x32xf32>
    %53 = arith.addf %49, %52 : vector<1x32xf32>
    %c0_12 = arith.constant 0 : index
    %c0_13 = arith.constant 0 : index
    %c0_14 = arith.constant 0 : index
    %54 = vector.load %arg7[%c0_12, %c0_13, %c0_14] : memref<1x8x32xf32, #tpu.memory_space<vmem>>, vector<1x1x32xf32>
    %55 = vector.shape_cast %54 : vector<1x1x32xf32> to vector<1x32xf32>
    %56 = vector.shape_cast %53 : vector<1x32xf32> to vector<1x1x32xf32>
    tpu.vector_store %arg7[%c0_12, %c0_13, %c0_14], %56 {strides = array<i32>} : memref<1x8x32xf32, #tpu.memory_space<vmem>>, vector<1x1x32xf32>,
    %57 = vector.extract_strided_slice %5 {offsets = [1, 0], sizes = [1, 32], strides = [1, 1]} : vector<3x32xf32> to vector<1x32xf32>
    %58 = vector.extract_strided_slice %6 {offsets = [0, 0], sizes = [1, 32], strides = [1, 1]} : vector<4x32xf32> to vector<1x32xf32>
    %59 = arith.mulf %57, %58 : vector<1x32xf32>
    %60 = arith.addf %7, %59 : vector<1x32xf32>
    %61 = vector.extract_strided_slice %5 {offsets = [2, 0], sizes = [1, 32], strides = [1, 1]} : vector<3x32xf32> to vector<1x32xf32>
    %62 = vector.extract_strided_slice %6 {offsets = [1, 0], sizes = [1, 32], strides = [1, 1]} : vector<4x32xf32> to vector<1x32xf32>
    %63 = arith.mulf %61, %62 : vector<1x32xf32>
    %64 = arith.addf %60, %63 : vector<1x32xf32>
    %65 = vector.extract_strided_slice %4 {offsets = [0, 0], sizes = [1, 32], strides = [1, 1]} : vector<8x32xf32> to vector<1x32xf32>
    %66 = vector.extract_strided_slice %6 {offsets = [2, 0], sizes = [1, 32], strides = [1, 1]} : vector<4x32xf32> to vector<1x32xf32>
    %67 = arith.mulf %65, %66 : vector<1x32xf32>
    %68 = arith.addf %64, %67 : vector<1x32xf32>
    %69 = vector.extract_strided_slice %4 {offsets = [1, 0], sizes = [1, 32], strides = [1, 1]} : vector<8x32xf32> to vector<1x32xf32>
    %70 = vector.extract_strided_slice %6 {offsets = [3, 0], sizes = [1, 32], strides = [1, 1]} : vector<4x32xf32> to vector<1x32xf32>
    %71 = arith.mulf %69, %70 : vector<1x32xf32>
    %72 = arith.addf %68, %71 : vector<1x32xf32>
    %c0_15 = arith.constant 0 : index
    %c1 = arith.constant 1 : index
    %c0_16 = arith.constant 0 : index
    %73 = vector.load %arg7[%c0_15, %c1, %c0_16] : memref<1x8x32xf32, #tpu.memory_space<vmem>>, vector<1x1x32xf32>
    %74 = vector.shape_cast %73 : vector<1x1x32xf32> to vector<1x32xf32>
    %75 = vector.shape_cast %72 : vector<1x32xf32> to vector<1x1x32xf32>
    tpu.vector_store %arg7[%c0_15, %c1, %c0_16], %75 {strides = array<i32>} : memref<1x8x32xf32, #tpu.memory_space<vmem>>, vector<1x1x32xf32>,
    %76 = vector.extract_strided_slice %5 {offsets = [2, 0], sizes = [1, 32], strides = [1, 1]} : vector<3x32xf32> to vector<1x32xf32>
    %77 = vector.extract_strided_slice %6 {offsets = [0, 0], sizes = [1, 32], strides = [1, 1]} : vector<4x32xf32> to vector<1x32xf32>
    %78 = arith.mulf %76, %77 : vector<1x32xf32>
    %79 = arith.addf %7, %78 : vector<1x32xf32>
    %80 = vector.extract_strided_slice %4 {offsets = [0, 0], sizes = [1, 32], strides = [1, 1]} : vector<8x32xf32> to vector<1x32xf32>
    %81 = vector.extract_strided_slice %6 {offsets = [1, 0], sizes = [1, 32], strides = [1, 1]} : vector<4x32xf32> to vector<1x32xf32>
    %82 = arith.mulf %80, %81 : vector<1x32xf32>
    %83 = arith.addf %79, %82 : vector<1x32xf32>
    %84 = vector.extract_strided_slice %4 {offsets = [1, 0], sizes = [1, 32], strides = [1, 1]} : vector<8x32xf32> to vector<1x32xf32>
    %85 = vector.extract_strided_slice %6 {offsets = [2, 0], sizes = [1, 32], strides = [1, 1]} : vector<4x32xf32> to vector<1x32xf32>
    %86 = arith.mulf %84, %85 : vector<1x32xf32>
    %87 = arith.addf %83, %86 : vector<1x32xf32>
    %88 = vector.extract_strided_slice %4 {offsets = [2, 0], sizes = [1, 32], strides = [1, 1]} : vector<8x32xf32> to vector<1x32xf32>
    %89 = vector.extract_strided_slice %6 {offsets = [3, 0], sizes = [1, 32], strides = [1, 1]} : vector<4x32xf32> to vector<1x32xf32>
    %90 = arith.mulf %88, %89 : vector<1x32xf32>
    %91 = arith.addf %87, %90 : vector<1x32xf32>
    %c0_17 = arith.constant 0 : index
    %c2 = arith.constant 2 : index
    %c0_18 = arith.constant 0 : index
    %92 = vector.load %arg7[%c0_17, %c2, %c0_18] : memref<1x8x32xf32, #tpu.memory_space<vmem>>, vector<1x1x32xf32>
    %93 = vector.shape_cast %92 : vector<1x1x32xf32> to vector<1x32xf32>
    %94 = vector.shape_cast %91 : vector<1x32xf32> to vector<1x1x32xf32>
    tpu.vector_store %arg7[%c0_17, %c2, %c0_18], %94 {strides = array<i32>} : memref<1x8x32xf32, #tpu.memory_space<vmem>>, vector<1x1x32xf32>,
    %c0_19 = arith.constant 0 : index
    %c5 = arith.constant 5 : index
    %c0_20 = arith.constant 0 : index
    %95 = vector.load %arg3[%c0_19, %c5, %c0_20] : memref<1x8x32xf32, #tpu.memory_space<vmem>>, vector<1x3x32xf32>
    %96 = vector.shape_cast %95 : vector<1x3x32xf32> to vector<3x32xf32>
    %c0_i32_21 = arith.constant 0 : i32
    %97 = arith.cmpi eq, %arg2, %c0_i32_21 : i32
    %98 = arith.extui %97 : i1 to i32
    %c0_i32_22 = arith.constant 0 : i32
    %99 = arith.cmpi ne, %98, %c0_i32_22 : i32
    scf.if %99 {
      %c0_25 = arith.constant 0 : index
      %c0_26 = arith.constant 0 : index
      %c0_27 = arith.constant 0 : index
      %101 = vector.load %arg8[%c0_25, %c0_26, %c0_27] : memref<1x3x32xf32, #tpu.memory_space<vmem>>, vector<1x3x32xf32>
      %102 = vector.shape_cast %101 : vector<1x3x32xf32> to vector<3x32xf32>
      %103 = vector.shape_cast %96 : vector<3x32xf32> to vector<1x3x32xf32>
      tpu.vector_store %arg8[%c0_25, %c0_26, %c0_27], %103 {strides = array<i32>} : memref<1x3x32xf32, #tpu.memory_space<vmem>>, vector<1x3x32xf32>,
    } else {
    }
    %c0_23 = arith.constant 0 : index
    %c0_24 = arith.constant 0 : index
    %100 = vector.load %arg9[%c0_23, %c0_24] : memref<3x32xf32, #tpu.memory_space<vmem>>, vector<3x32xf32>
    tpu.vector_store %arg9[%c0_23, %c0_24], %96 {strides = array<i32>} : memref<3x32xf32, #tpu.memory_space<vmem>>, vector<3x32xf32>,
    return
  }
  func.func @transform_0(%arg0: i32, %arg1: i32, %arg2: i32) -> (i32, i32, i32) {
    %c0_i32 = arith.constant 0 : i32
    return %arg0, %arg2, %arg1 : i32, i32, i32
  }
  func.func @transform_1(%arg0: i32, %arg1: i32, %arg2: i32) -> (i32, i32, i32) {
    %c0_i32 = arith.constant 0 : i32
    %c0_i32_0 = arith.constant 0 : i32
    return %arg0, %c0_i32, %arg1 : i32, i32, i32
  }
  func.func @transform_2(%arg0: i32, %arg1: i32, %arg2: i32) -> (i32, i32) {
    %c0_i32 = arith.constant 0 : i32
    %c0_i32_0 = arith.constant 0 : i32
    return %c0_i32, %arg1 : i32, i32
  }
  func.func @transform_3(%arg0: i32, %arg1: i32, %arg2: i32) -> (i32, i32) {
    %c0_i32 = arith.constant 0 : i32
    %c0_i32_0 = arith.constant 0 : i32
    return %c0_i32, %arg1 : i32, i32
  }
  func.func @transform_4(%arg0: i32, %arg1: i32, %arg2: i32) -> (i32, i32, i32) {
    %c0_i32 = arith.constant 0 : i32
    return %arg0, %arg2, %arg1 : i32, i32, i32
  }
  func.func @transform_5(%arg0: i32, %arg1: i32, %arg2: i32) -> (i32, i32, i32) {
    %c0_i32 = arith.constant 0 : i32
    %c0_i32_0 = arith.constant 0 : i32
    return %arg0, %c0_i32, %arg1 : i32, i32, i32
  }
}

</mosaic_0001>

<bundles_post_ra>
// kernel: tpu_custom_call.1
= control target key start
LH: loop header
LB: loop body
LE: loop exit
PB: predicated region body
PF: predicated region fallthrough
CT: control target
= control target key end

     0   :  { %6 = vsyncpa [#allocation3], 0  ;;  %s125_s0 = inlined_call_operand.hbm [shape: f32[8,128], index: 0, kind: input, shape index: {}]   ;;  %s126_s1 = inlined_call_operand.hbm [shape: f32[8,128], index: 1, kind: output, shape index: {}]  }
   0x1   :  { %7 = vsyncpa [#allocation4], 0  ;;  %s89_s6 = smov [#allocation2]   ;;  %s41_s10 = scalar_lea.hbm %s125_s0, 128 }
   0x2   :  { %s14_s7 = sshll.u32 %s89_s6, 4  ;;  %p42_p0 = scmp.ne.s32.totalorder %s125_s0, %s41_s10  ;;  %s15_s7 = int_to_ptr.vmem [resolvable:$true] %s14_s7 }
   0x3   :  { %p45_p1 = scmp.lt.u32.totalorder %s41_s10, %s125_s0 }
   0x5   :  { %p47_p2 = pnand %p45_p1, %p42_p0 }
   0x7   :  { %50 = shalt.err (!%p47_p2)
}
   0x8   :  { %s51_s15 = scalar_lea.vmem %s15_s7, 128  ;;  %p56_p4 = scmp.lt.s32.totalorder %s15_s7, %s15_s7 }
   0x9   :  { %p52_p3 = scmp.ne.s32.totalorder %s15_s7, %s51_s15  ;;  %p57_p5 = scmp.lt.s32.totalorder %s51_s15, %s51_s15 }
   0xb   :  { %p58_p6 = por %p57_p5, %p56_p4 }
   0xd   :  { %p59_p7 = pnand %p58_p6, %p52_p3 }
   0xf   :  { %62 = shalt.err (!%p59_p7)
}
  0x10   :  { %17 = dma.hbm_to_vmem [thread:$0]  %s125_s0, 128, %s15_s7, [#allocation3]  }
  0x11   :  { %85 = dma.done.wait [#allocation3], 128  }
  0x12   :  { %86 = vsyncadd [#allocation3], 4294967168  ;;  %s90_s18 = smov [#allocation5]   ;;  %v21_v0 = vld [vmem:[#allocation2] sm:$0xff] }
  0x13   :  { %s30_s19 = sshll.u32 %s90_s18, 4  ;;  %v22_v1 = vrot.slane %v21_v0, 7  ;;  %s31_s19 = int_to_ptr.vmem [resolvable:$true] %s30_s19 }
  0x14   :  { %s63_s20 = scalar_lea.vmem %s31_s19, 128  ;;  %p68_p9 = scmp.lt.s32.totalorder %s31_s19, %s31_s19 }
  0x15   :  { %23 = vst [vmem:[#allocation5] sm:$0xff] %v22_v1  ;;  %p64_p8 = scmp.ne.s32.totalorder %s31_s19, %s63_s20  ;;  %p69_p10 = scmp.lt.s32.totalorder %s63_s20, %s63_s20 }
  0x17   :  { %p70_p11 = por %p69_p10, %p68_p9 }
  0x19   :  { %p71_p12 = pnand %p70_p11, %p64_p8 }
  0x1b   :  { %74 = shalt.err (!%p71_p12)
}
  0x1c   :  { %s75_s23 = scalar_lea.hbm %s126_s1, 128 }
  0x1d   :  { %p76_p13 = scmp.ne.s32.totalorder %s126_s1, %s75_s23  ;;  %p79_p0 = scmp.lt.u32.totalorder %s75_s23, %s126_s1 }
  0x1f   :  { %p81_p1 = pnand %p79_p0, %p76_p13 }
  0x21   :  { %84 = shalt.err (!%p81_p1)
}
  0x22   :  { %33 = dma.vmem_to_hbm [thread:$0]  %s31_s19, 128, %s126_s1, [#allocation4]  }
  0x23   :  { %87 = dma.done.wait [#allocation4], 128  }
  0x24   :  { %88 = vsyncadd [#allocation4], 4294967168 }
  0x25   :  { %37 = vsyncpa [#allocation3], 1 }
  0x26   :  { %38 = vsyncpa [#allocation4], 1 }

// kernel: tpu_custom_call.1
= control target key start
LH: loop header
LB: loop body
LE: loop exit
PB: predicated region body
PF: predicated region fallthrough
CT: control target
= control target key end

     0   :  { %11 = vsyncpa [#allocation4], 0  ;;  %s1167_s0 = inlined_call_operand.hbm [shape: f32[2,8,32], index: 0, kind: input, shape index: {}]   ;;  %s1168_s1 = inlined_call_operand.vmem [shape: f32[2,3,32], index: 1, kind: input, shape index: {}]   ;;  %s1169_s2 = inlined_call_operand.vmem [shape: f32[4,32], index: 2, kind: input, shape index: {}]   ;;  %s1170_s3 = inlined_call_operand.vmem [shape: f32[1,32], index: 3, kind: input, shape index: {}]   ;;  %s1171_s4 = inlined_call_operand.hbm [shape: f32[2,8,32], index: 4, kind: output, shape index: {0}]   ;;  %s1172_s5 = inlined_call_operand.vmem [shape: f32[2,3,32], index: 5, kind: output, shape index: {1}]  }
   0x1   :  { %13 = vsyncpa [#allocation4 + $0x1], 0 }
   0x2   :  { %14 = vsyncpa [#allocation5], 0 }
   0x3   :  { %16 = vsyncpa [#allocation5 + $0x1], 0  ;;  %s967_s18 = smov 0   ;;  %s969_s19 = smov 0  }
   0x4   :  { %s971_s20 = smov 0   ;;  %s973_s21 = smov 0  }
   0x5   :  { %s975_s22 = smov 0   ;;  %s977_s23 = smov 0  }
   0x6 LB: > { %s740_s24 = sadd.s32 4294967295, %s932_s23   ;;  %s741_s25 = sadd.s32 4294967294, %s932_s23   ;;  %s932_s23 = sphi %s977_s23, %s22_s23   ;;  %s928_s22 = sphi %s975_s22, %s1188_s22   ;;  %s924_s21 = sphi %s973_s21, %s1187_s21   ;;  %s920_s20 = sphi %s971_s20, %s1186_s20   ;;  %s916_s19 = sphi %s969_s19, %s1185_s19   ;;  %s912_s18 = sphi %s967_s18, %s1184_s18  }
   0x7   : > { %s41_s26 = sadd.s32 1, %s928_s22  ;;  %s52_s27 = sadd.s32 1, %s920_s20 }
   0x8   : > { %p43_p0 = scmp.ge.s32.totalorder %s41_s26, 2  ;;  %p59_p1 = scmp.ne.s32.totalorder %s920_s20, %s916_s19 }
   0x9   : > { %p60_p2 = scmp.eq.s32.totalorder %s932_s23, 0  ;;  %p65_p3 = scmp.ne.s32.totalorder %s916_s19, %s912_s18 }
   0xa   : > { %s1190_s26 = smov (%p43_p0, %s41_s26), 0  ;;  %p66_p5 = scmp.eq.s32.totalorder %s740_s24, 0 }
   0xb   : > { %p1008_p4 = por %p60_p2, %p59_p1  ;;  %s45_s29 = ssub.s32 %s928_s22, %s1190_s26 }
   0xc   : > { %p173_p6 = scmp.eq.s32.totalorder %s740_s24, 1  ;;  %p50_p7 = scmp.eq.s32.totalorder %s45_s29, 0 }
   0xd   : > { %p1014_p8 = por %p66_p5, %p65_p3  ;;  %p179_p10 = scmp.eq.s32.totalorder %s741_s25, 1 }
   0xe   : > { %p1018_p9 = por %p173_p6, %p59_p1  ;;  %p769_p13 = scmp.lt.s32.totalorder %s932_s23, 2 }
   0xf   : > { %s1023_s7 = scalar_select %p50_p7, %s920_s20, %s52_s27  }
  0x10   : > { %s1176_s6 = scalar_select %p1018_p9, 1, 0 }
  0x11   : > { %p1025_p11 = por %p179_p10, %p65_p3  ;;  %s240_s9 = sand.u32 1, %s920_s20  }
  0x12   : > { %s746_s10 = sshll.u32 %s240_s9, 3  ;;  %s747_s11 = sshll.u32 %s928_s22, 7 }
  0x13   : > { %s1177_s8 = scalar_select %p1025_p11, 1, 0 }
  0x14   : > { %s1036_s14 = scalar_lea.hbm %s1167_s0, %s747_s11  ;;  %s244_s15 = scalar_lea.vmem [#allocation3], %s746_s10 }
  0x15   : > { %s253_s16 = sshll.u32 %s244_s15, 4  ;;  %p1042_p0 = pnand %p769_p13, %p1008_p4  ;;  %s1038_s16 = int_to_ptr.vmem [resolvable:$true] %s253_s16 }
  0x16   : > { %s241_s24 = scalar_lea.sflag [#allocation4], %s240_s9  ;;  %s820_s25 = scalar_lea.hbm %s1036_s14, 128 }
  0x17   : > { %p821_p3 = scmp.ne.s32.totalorder %s1036_s14, %s820_s25  ;;  %p822_p5 = pneg %p1042_p0 }
  0x18   : > { %s825_s28 = scalar_lea.hbm %s1167_s0, 256  ;;  %p826_p4 = scmp.lt.u32.totalorder %s1036_s14, %s1167_s0 }
  0x19   : > { %p823_p6 = pnand %p822_p5, %p821_p3  ;;  %p827_p10 = scmp.lt.u32.totalorder %s825_s28, %s820_s25 }
  0x1a   : > { %p829_p12 = scmp.lt.u32.totalorder %s820_s25, %s1036_s14 }
  0x1b   : > { %p824_p7 = pneg %p823_p6  ;;  %p828_p13 = por %p827_p10, %p826_p4 }
  0x1d   : > { %p830_p1 = por %p829_p12, %p828_p13 }
  0x1f   : > { %p831_p2 = pnand %p830_p1, %p824_p7 }
  0x21   : > { %834 = shalt.err (!%p831_p2)
}
  0x22   : > { %s835_s9 = scalar_lea.vmem %s1038_s16, 128  ;;  %s934_s12 = smov [#allocation3]  }
  0x23   : > { %p836_p3 = scmp.ne.s32.totalorder %s1038_s16, %s835_s9  ;;  %s840_s13 = sshll.u32 %s934_s12, 4  ;;  %s841_s13 = int_to_ptr.vmem [resolvable:$false] %s840_s13 }
  0x24   : > { %s842_s15 = scalar_lea.vmem %s841_s13, 256  ;;  %p843_p9 = scmp.lt.s32.totalorder %s1038_s16, %s841_s13 }
  0x25   : > { %p838_p6 = pnand %p836_p3, %p822_p5  ;;  %p844_p4 = scmp.lt.s32.totalorder %s842_s15, %s835_s9 }
  0x27   : > { %p839_p11 = pneg %p838_p6  ;;  %p845_p10 = por %p844_p4, %p843_p9 }
  0x29   : > { %p846_p12 = pnand %p845_p10, %p839_p11 }
  0x2b   : > { %849 = shalt.err (!%p846_p12)
}
  0x2c   : > { %764 = dma.hbm_to_vmem [thread:$0]  (!%p1042_p0), %s1036_s14, 128, %s1038_s16, %s241_s24  }
  0x2d   : > { %p1179_p1 = scmp.lt.s32.totalorder %s932_s23, 3  ;;  %p1180_p2 = scmp.ge.s32.totalorder %s932_s23, 1 }
  0x2f   : > { %p269_p5 = pnand %p1180_p2, %p1179_p1 }
  0x30   : > { %s1078_s25 = sand.u32 (!%p269_p5), 1, %s916_s19  }
  0x31   : > { %272 = sbr.rel (%p269_p5) target bundleno = 103 (0x67), region = 36  ;;  %s749_s27 = sshll.u32 (!%p269_p5), %s1078_s25, 3 }
  0x32   : > { %s275_s29 = scalar_lea.sflag (!%p269_p5), [#allocation4], %s1078_s25  ;;  %s278_s17 = scalar_lea.vmem (!%p269_p5), [#allocation3], %s749_s27 }
  0x38   : > { %903 = dma.done.wait (%p1014_p8), %s275_s29, 128  }
  0x39   : > { %905 = vsyncadd (%p1014_p8), %s275_s29, 4294967168  ;;  %p326_p9 = scmp.lt.s32.totalorder %s924_s21, 1  ;;  %v359_v0 = vlaneseq  ;;  %vm352_vm0 = vcmask 256000   ;;  %v935_v6 = vmov 1966171168   ;;  %v354_v9 = vld [vmem:[%s278_s17] sm:$0xff] }
  0x3a   : > { %v407_v7 = vunpack.c.l.s4 %v935_v6  ;;  %v356_v10 = vld [vmem:[%s1169_s2] sm:$0xf]  ;;  %v371_v13 = vrot.slane %v354_v9, 7  ;;  %v381_v15 = vrot.slane %v354_v9, 6  ;;  %v548_v16 = vld [vmem:[%s278_s17 + $0x5] sm:$0x7] }
  0x3b   : > { %s327_s14 = scalar_select %p326_p9, %s924_s21, 1  ;;  %v360_v1 = vshrl.u32 %v359_v0, 7  ;;  %v357_v11 = vld [vmem:[%s1170_s3] sm:$0x1]  ;;  %v391_v22 = vrot.slane %v354_v9, 5  ;;  %v440_v24 = vrot.slane %v356_v10, 7 }
  0x3c   : > { %v408_v19 = vunpack.c.0.s8 %v407_v7  ;;  %v471_v25 = vrot.slane %v356_v10, 2  ;;  %v494_v28 = vrot.slane %v356_v10, 6  ;;  %v515_v29 = vrot.slane %v356_v10, 1  ;;  %s1107_s17 = scalar_lea.vmem [#allocation6], %s749_s27  ;;  %p1181_p11 = scmp.ne.s32.totalorder %s1176_s6, 0 }
  0x3d   : > { %s751_s16 = sshll.u32 %s327_s14, 2  ;;  %v366_v2 = vsub.s32 3, %v360_v1  ;;  %v377_v3 = vsub.s32 2, %v360_v1  ;;  %v361_v4 = vsub.s32 0, %v360_v1  ;;  %v387_v5 = vsub.s32 1, %v360_v1  ;;  %s579_s27 = sshll.u32 %s1107_s17, 4  ;;  %s1113_s27 = int_to_ptr.vmem [resolvable:$true] %s579_s27 }
  0x3e   : > { %s332_s10 = scalar_lea.vmem %s1168_s1, %s751_s16  ;;  %s346_s9 = scalar_lea.vmem %s1172_s5, %s751_s16  ;;  %v411_v30 = vsub.s32 %v408_v19, %v360_v1  ;;  %v473_v33 = vmul.f32 %v471_v25, %v354_v9  ;;  %v517_v34 = vmul.f32 %v515_v29, %v354_v9  ;;  %vm401_vm1 = vcmask 261120  }
  0x3f   : > { %v351_v8 = vld [vmem:[%s332_s10] sm:$0x7]  ;;  %v367_v12 = vrot.slane %v356_v10, %v366_v2  ;;  %v378_v14 = vrot.slane %v356_v10, %v377_v3  ;;  %v362_v17 = vrot.slane %v357_v11, %v361_v4  ;;  %v388_v18 = vrot.slane %v356_v10, %v387_v5  ;;  %553 = vst.msk [vmem:[%s346_s9] sm:$0x7] %vm352_vm0, %v548_v16  ;;  %s754_s14 = sshll.u32 %s924_s21, 7  ;;  %s557_s10 = scalar_lea.sflag [#allocation5], %s1078_s25 }
  0x40   : > { %353 = vst.msk [vmem:[#allocation2] sm:$0x7] %vm352_vm0, %v351_v8  ;;  %v398_v23 = vrot.slane %v356_v10, %v361_v4  ;;  %v526_v40 = vrot.slane %v517_v34, %v411_v30  ;;  %v482_v44 = vrot.slane %v473_v33, %v411_v30  ;;  %v434_v45 = vrot.slane %v356_v10, 3  ;;  %s1118_s28 = scalar_lea.hbm %s1171_s4, %s754_s14  ;;  %s850_s30 = scalar_lea.vmem %s1113_s27, 128 }
  0x41   : > { %v368_v20 = vmul.f32 %v367_v12, %v354_v9  ;;  %v379_v21 = vmul.f32 %v378_v14, %v371_v13  ;;  %v389_v27 = vmul.f32 %v388_v18, %v381_v15  ;;  %vm438_vm2 = vcmask 253952   ;;  %p851_p8 = scmp.ne.s32.totalorder %s1113_s27, %s850_s30  ;;  %s936_s21 = smov [#allocation6]  }
  0x42   : > { %v399_v32 = vmul.f32 %v398_v23, %v391_v22  ;;  %v527_v52 = vcombine.high %v526_v40, %v526_v40  ;;  %v483_v56 = vcombine.high %v482_v44, %v482_v44  ;;  %v436_v57 = vmul.f32 %v434_v45, %v354_v9  ;;  %s854_s11 = sshll.u32 %s936_s21, 4  ;;  %s855_s11 = int_to_ptr.vmem [resolvable:$false] %s854_s11 }
  0x43   : > { %v369_v26 = vadd.f32 %v368_v20, %v362_v17  ;;  %v534_v59 = vrot.slane %v526_v40, %v411_v30  ;;  %p852_p0 = pnand %p851_p8, %p1181_p11  ;;  %s856_s9 = scalar_lea.vmem %s855_s11, 256 }
  0x44   : > { %v541_v1 = vrot.slane %v527_v52, %v411_v30  ;;  %v490_v4 = vrot.slane %v483_v56, %v411_v30  ;;  %p857_p13 = scmp.lt.s32.totalorder %s1113_s27, %s855_s11  ;;  %p858_p3 = scmp.lt.s32.totalorder %s856_s9, %s850_s30 }
  0x45   : > { %v380_v31 = vadd.f32 %v379_v21, %v369_v26  ;;  %v544_v6 = vcombine.high %v534_v59, %v534_v59  ;;  %p853_p7 = pneg %p852_p0 }
  0x46   : > { %p859_p6 = por %p858_p3, %p857_p13 }
  0x47   : > { %v355_v35 = vld [vmem:[#allocation2] sm:$0x7]  ;;  %v390_v36 = vadd.f32 %v389_v27, %v380_v31 }
  0x48   : > { %v403_v37 = vmul.f32 %v356_v10, %v355_v35  ;;  %v442_v38 = vmul.f32 %v440_v24, %v355_v35  ;;  %v496_v39 = vmul.f32 %v494_v28, %v355_v35  ;;  %555 = vst.msk [vmem:[#allocation2] sm:$0x7] %vm352_vm0, %v548_v16  ;;  %p860_p4 = pnand %p859_p6, %p853_p7 }
  0x49   : > { %v400_v41 = vadd.f32 %v399_v32, %v390_v36 }
  0x4a   : > { %v412_v42 = vrot.slane %v403_v37, %v411_v30  ;;  %v450_v43 = vrot.slane %v442_v38, %v411_v30  ;;  %v504_v46 = vrot.slane %v496_v39, %v411_v30  ;;  %v404_v53 = vadd.f32 %v403_v37, %v357_v11 }
  0x4b   : > { %402 = vst.msk [vmem:[%s1107_s17] sm:$0xff] %vm401_vm1, %v400_v41 }
  0x4c   : > { %v413_v47 = vcombine.high %v412_v42, %v412_v42  ;;  %v420_v48 = vrot.slane %v412_v42, %v411_v30  ;;  %v451_v49 = vcombine.high %v450_v43, %v450_v43  ;;  %v458_v50 = vrot.slane %v450_v43, %v411_v30 }
  0x4d   : > { %v511_v51 = vrot.slane %v504_v46, %v411_v30 }
  0x4e   : > { %v427_v54 = vrot.slane %v413_v47, %v411_v30  ;;  %v465_v55 = vrot.slane %v451_v49, %v411_v30  ;;  %v430_v61 = vcombine.high %v420_v48, %v420_v48  ;;  %v468_v63 = vcombine.high %v458_v50, %v458_v50 }
  0x4f   : > { %v512_v58 = vcombine.high %v511_v51, %v511_v51 }
  0x50   : > { %v429_v60 = vadd.f32 %v427_v54, %v404_v53  ;;  %v467_v62 = vadd.f32 %v465_v55, %v357_v11 }
  0x51   : > { %v514_v0 = vadd.f32 %v512_v58, %v357_v11 }
  0x52   : > { %v432_v2 = vadd.f32 %v430_v61, %v429_v60  ;;  %v470_v3 = vadd.f32 %v468_v63, %v467_v62 }
  0x53   : > { %v518_v5 = vadd.f32 %v517_v34, %v514_v0 }
  0x54   : > { %v437_v7 = vadd.f32 %v436_v57, %v432_v2  ;;  %v474_v8 = vadd.f32 %v473_v33, %v470_v3 }
  0x55   : > { %v543_v9 = vadd.f32 %v541_v1, %v518_v5 }
  0x56   : > { %439 = vst.msk [vmem:[%s1107_s17] sm:$0x1] %vm438_vm2, %v437_v7  ;;  %v492_v10 = vadd.f32 %v490_v4, %v474_v8 }
  0x57   : > { %v546_v11 = vadd.f32 %v544_v6, %v543_v9 }
  0x58   : > { %493 = vst.msk [vmem:[%s1107_s17 + $0x1] sm:$0x1] %vm438_vm2, %v492_v10 }
  0x59   : > { %547 = vst.msk [vmem:[%s1107_s17 + $0x2] sm:$0x1] %vm438_vm2, %v546_v11 }
  0x5a   : > { %863 = shalt.err (!%p860_p4)
}
  0x5b   : > { %s864_s25 = scalar_lea.hbm %s1118_s28, 128  ;;  %s868_s15 = scalar_lea.hbm %s1171_s4, 256 }
  0x5c   : > { %p865_p10 = scmp.ne.s32.totalorder %s1118_s28, %s864_s25  ;;  %p869_p2 = scmp.lt.u32.totalorder %s1118_s28, %s1171_s4 }
  0x5d   : > { %p870_p5 = scmp.lt.u32.totalorder %s868_s15, %s864_s25  ;;  %p872_p8 = scmp.lt.u32.totalorder %s864_s25, %s1118_s28 }
  0x5e   : > { %p866_p12 = pnand %p865_p10, %p1181_p11 }
  0x5f   : > { %p871_p9 = por %p870_p5, %p869_p2 }
  0x60   : > { %p867_p1 = pneg %p866_p12 }
  0x61   : > { %p873_p0 = por %p872_p8, %p871_p9 }
  0x63   : > { %p874_p7 = pnand %p873_p0, %p867_p1 }
  0x65   : > { %877 = shalt.err (!%p874_p7)
}
  0x66   : > { %759 = dma.vmem_to_hbm [thread:$0]  (%p1181_p11), %s1113_s27, 128, %s1118_s28, %s557_s10  }
  0x67 PF: > { %s594_s14 = sand.u32 1, %s912_s18   ;;  %p1182_p13 = scmp.ne.s32.totalorder %s1177_s8, 0 }
  0x68   : > { %p1183_p3 = scmp.ge.s32.totalorder %s932_s23, 2  ;;  %s595_s16 = scalar_lea.sflag [#allocation5], %s594_s14 }
  0x6a   : > { %p766_p6 = pnand %p1183_p3, %p1182_p13 }
  0x6c   : > { %907 = dma.done.wait (!%p766_p6), %s595_s16, 128  }
  0x6d   : > { %909 = vsyncadd (!%p766_p6), %s595_s16, 4294967168  ;;  %s22_s23 = sadd.s32 1, %s932_s23   ;;  %s1184_s18 = smov %s916_s19 }
  0x6e   : > { %p19_p4 = scmp.ge.s32.totalorder %s22_s23, 4   ;;  %s1185_s19 = smov %s920_s20 }
  0x6f   : > { %s1186_s20 = smov %s1023_s7  ;;  %s1187_s21 = smov %s928_s22 }
  0x70   : > { %s1188_s22 = smov %s1190_s26  ;;  %21 = sbr.rel (!%p19_p4) target bundleno = 6 (0x6), region = 110 }
  0x77   :  { %610 = vsyncpa [#allocation4], 1 }
  0x78   :  { %612 = vsyncpa [#allocation4 + $0x1], 1 }
  0x79   :  { %613 = vsyncpa [#allocation5], 1 }
  0x7a   :  { %615 = vsyncpa [#allocation5 + $0x1], 1 }

</bundles_post_ra>
